<compile_context>
chip_gen: v7x
topology: tpu7x:2x2x1
jax: 0.10.0
libtpu: 0.0.40
codegen_flags: <defaults>
</compile_context>

<pallas_src>
import jax
import jax.numpy as jnp
from jax.experimental import pallas as pl
from jax.experimental.pallas import tpu as pltpu

EPS = 1e-5
SLOPE = 0.01  # LeakyReLU negative slope


def make_res_kernel(c, h_img):
    """Build the Res kernel for channel count `c` and image height `h_img`."""

    def res_kernel(x_ref, g1_ref, b1_ref, g2_ref, b2_ref, band1_ref, band2_ref, out_ref):
        x = x_ref[...]                       # (B*H, W*C) f32, lane-dense
        bh, wc = x.shape
        w = wc // c
        inv_n = 1.0 / float(bh * w)          # 1 / (B*H*W) elements per channel

        # boundary-row masks for the vertical (sublane) rolls; shared by both convs
        row = jax.lax.broadcasted_iota(jnp.int32, (bh, 1), 0)
        y_pos = row % h_img
        first_row = y_pos == 0               # row y-1 does not exist -> zero after roll-down
        last_row = y_pos == (h_img - 1)      # row y+1 does not exist -> zero after roll-up

        def bn_lrelu(h, g, b):
            # one-pass training-mode BatchNorm2d (biased variance) + LeakyReLU.
            # per-lane sum and sum-of-squares stacked so the log2(W) cross-lane roll butterfly
            # (XLU) reduces both at once; affine folded into a single scale/shift (one VPU pass).
            stats = jnp.concatenate(
                [jnp.sum(h, axis=0, keepdims=True),
                 jnp.sum(h * h, axis=0, keepdims=True)], axis=0)        # (2, W*C)
            s = c
            while s < wc:
                stats = stats + pltpu.roll(stats, shift=s, axis=1)
                s *= 2
            mean = stats[0:1] * inv_n
            ex2 = stats[1:2] * inv_n
            var = jnp.maximum(ex2 - mean * mean, 0.0)   # clamp guards one-pass cancellation
            scale = g * jax.lax.rsqrt(var + EPS)        # EUP
            shift = b - mean * scale
            out = h * scale + shift
            return jnp.where(out >= 0, out, SLOPE * out)

        def conv3x3(h, band_ref):
            # Vertical halo: sublane rolls + boundary-row zeroing (no (BH,BH) matmuls).
            # Horizontal taps + zero padding are folded into one block-banded weight matrix,
            # and all three dy taps are fused into a single K = 3*W*C MXU matmul.
            h_dn = jnp.where(first_row, 0.0, pltpu.roll(h, shift=1, axis=0))        # row y-1
            h_up = jnp.where(last_row, 0.0, pltpu.roll(h, shift=bh - 1, axis=0))    # row y+1
            stacked = jnp.concatenate([h_dn, h, h_up], axis=1)                      # (BH, 3*W*C)
            return jnp.dot(stacked, band_ref[...], preferred_element_type=jnp.float32)

        h = bn_lrelu(x, g1_ref[...], b1_ref[...])
        h = conv3x3(h, band1_ref)
        h = bn_lrelu(h, g2_ref[...], b2_ref[...])
        h = conv3x3(h, band2_ref)
        out_ref[...] = x + h                 # residual add, lane-dense unmasked store

    return res_kernel


def res_forward(x_nchw, g1, b1, w1, g2, b2, w2):
    """x_nchw: (B, C, H, W) f32; conv weights: (Cout, Cin, 3, 3) PyTorch OIHW (Cout == Cin == C)."""
    B, C, H, W = x_nchw.shape
    assert (W & (W - 1)) == 0, "roll-based channel reduction assumes W is a power of two"
    BH, WC = B * H, W * C

    # lane-dense activation slab: NCHW -> NHWC -> (B*H, W*C)
    x2d = jnp.transpose(x_nchw, (0, 2, 3, 1)).reshape(BH, WC).astype(jnp.float32)

    # per-channel affine params tiled over W so they broadcast along the lane axis
    def tile_c(v):
        return jnp.tile(v.astype(jnp.float32), W).reshape(1, WC)

    # stacked block-banded weight matrix: (3*W*C, W*C) with
    #   band[dy*WC + wi*C + ci, wo*C + co] = weight[co, ci, dy, wi - wo + 1] if 0 <= wi-wo+1 <= 2
    # (the horizontal zero padding is encoded by the band structure).
    # TODO(synk): for WC >= 256 the band is mostly structural zeros -> switch to per-dx lane rolls
    # with true (C, C) contractions instead of the (W*C)^2 banded form.
    def make_band(wt):
        wt = wt.astype(jnp.float32)
        wi = jnp.arange(W)
        wo = jnp.arange(W)
        dx = wi[:, None] - wo[None, :] + 1                                # (W, W)
        valid = ((dx >= 0) & (dx <= 2)).astype(jnp.float32)
        dxc = jnp.clip(dx, 0, 2)
        blocks = []
        for dy in range(3):
            w_t = jnp.transpose(wt[:, :, dy, :], (2, 1, 0))               # (dx, ci, co)
            blk = w_t[dxc] * valid[:, :, None, None]                      # (wi, wo, ci, co)
            blocks.append(jnp.transpose(blk, (0, 2, 1, 3)).reshape(WC, WC))
        return jnp.concatenate(blocks, axis=0)                            # (3*WC, WC)

    out2d = pl.pallas_call(
        make_res_kernel(C, H),
        out_shape=jax.ShapeDtypeStruct((BH, WC), jnp.float32),
        in_specs=[pl.BlockSpec(memory_space=pltpu.MemorySpace.VMEM)] * 7,
        out_specs=pl.BlockSpec(memory_space=pltpu.MemorySpace.VMEM),
    )(x2d, tile_c(g1), tile_c(b1), tile_c(g2), tile_c(b2), make_band(w1), make_band(w2))

    # TODO(synk): in a full network keep the NHWC lane-dense slab resident across Res blocks
    # instead of paying these two HBM-streaming transposes around every tiny kernel.
    return jnp.transpose(out2d.reshape(B, H, W, C), (0, 3, 1, 2))


# ---------------- pure-JAX reference (mirrors the PyTorch module) ----------------
def _bn_lrelu_ref(x, g, b):  # NCHW, training-mode BN (biased batch variance)
    mean = jnp.mean(x, axis=(0, 2, 3), keepdims=True)
    var = jnp.mean((x - mean) ** 2, axis=(0, 2, 3), keepdims=True)
    y = (x - mean) / jnp.sqrt(var + EPS) * g.reshape(1, -1, 1, 1) + b.reshape(1, -1, 1, 1)
    return jnp.where(y >= 0, y, SLOPE * y)


def _conv_ref(x, w):  # NCHW, OIHW, padding=1, no bias
    return jax.lax.conv_general_dilated(
        x, w, window_strides=(1, 1), padding=[(1, 1), (1, 1)],
        dimension_numbers=('NCHW', 'OIHW', 'NCHW'))


def res_forward_ref(x, g1, b1, w1, g2, b2, w2):
    h = _bn_lrelu_ref(x, g1, b1)
    h = _conv_ref(h, w1)
    h = _bn_lrelu_ref(h, g2, b2)
    h = _conv_ref(h, w2)
    return x + h


if __name__ == "__main__":
    B, C, H, W = 2, 8, 16, 16  # filters = 8  ->  W*C = 128 (exactly one lane-dense vreg row)

    key = jax.random.PRNGKey(0)
    ks = jax.random.split(key, 7)
    g1 = 1.0 + 0.1 * jax.random.normal(ks[0], (C,), jnp.float32)
    b1 = 0.1 * jax.random.normal(ks[1], (C,), jnp.float32)
    w1 = 0.1 * jax.random.normal(ks[2], (C, C, 3, 3), jnp.float32)
    g2 = 1.0 + 0.1 * jax.random.normal(ks[3], (C,), jnp.float32)
    b2 = 0.1 * jax.random.normal(ks[4], (C,), jnp.float32)
    w2 = 0.1 * jax.random.normal(ks[5], (C, C, 3, 3), jnp.float32)
    x = jax.random.normal(ks[6], (B, C, H, W), jnp.float32)

    out = jax.block_until_ready(res_forward(x, g1, b1, w1, g2, b2, w2))
    ref = jax.block_until_ready(res_forward_ref(x, g1, b1, w1, g2, b2, w2))

    assert out.shape == (B, C, H, W)
    if not jnp.allclose(out, ref, atol=1e-4, rtol=1e-4):
        err = float(jnp.max(jnp.abs(out - ref)))
        raise AssertionError(f"Pallas Res kernel does not match JAX reference (max abs err {err})")
    print("KERNEL_OK")
</pallas_src>

<mosaic_0001>
module attributes {stable_mosaic.version = 11 : i64} {
  func.func @res_kernel(%arg0: memref<32x128xf32, #tpu.memory_space<vmem>>, %arg1: memref<1x128xf32, #tpu.memory_space<vmem>>, %arg2: memref<1x128xf32, #tpu.memory_space<vmem>>, %arg3: memref<1x128xf32, #tpu.memory_space<vmem>>, %arg4: memref<1x128xf32, #tpu.memory_space<vmem>>, %arg5: memref<384x128xf32, #tpu.memory_space<vmem>>, %arg6: memref<384x128xf32, #tpu.memory_space<vmem>>, %arg7: memref<32x128xf32, #tpu.memory_space<vmem>>) attributes {dimension_semantics = [], scalar_prefetch = 0 : i64, scratch_operands = 0 : i64, tpu.core_type = #tpu.core_type<tc>} {
    %c0 = arith.constant 0 : index
    %c0_0 = arith.constant 0 : index
    %0 = vector.load %arg0[%c0, %c0_0] : memref<32x128xf32, #tpu.memory_space<vmem>>, vector<32x128xf32>
    %1 = tpu.iota {dimensions = array<i32: 0>} : vector<32x1xi32>
    %c16_i32 = arith.constant 16 : i32
    %c0_i32 = arith.constant 0 : i32
    %2 = arith.cmpi eq, %c16_i32, %c0_i32 : i32
    %c1_i32 = arith.constant 1 : i32
    %3 = arith.select %2, %c1_i32, %c16_i32 : i32
    %4 = vector.broadcast %3 : i32 to vector<32x1xi32>
    %5 = arith.remsi %1, %4 : vector<32x1xi32>
    %c0_i32_1 = arith.constant 0 : i32
    %6 = vector.broadcast %c0_i32_1 : i32 to vector<32x1xi32>
    %7 = arith.cmpi ne, %5, %6 : vector<32x1xi32>
    %c0_i32_2 = arith.constant 0 : i32
    %8 = vector.broadcast %c0_i32_2 : i32 to vector<32x1xi32>
    %9 = arith.cmpi slt, %5, %8 : vector<32x1xi32>
    %c0_i32_3 = arith.constant 0 : i32
    %10 = arith.cmpi slt, %3, %c0_i32_3 : i32
    %11 = vector.broadcast %10 : i1 to vector<32x1xi1>
    %12 = vector.broadcast %11 : vector<32x1xi1> to vector<32x1xi1>
    %13 = arith.xori %9, %12 : vector<32x1xi1>
    %14 = arith.andi %13, %7 : vector<32x1xi1>
    %15 = vector.broadcast %3 : i32 to vector<32x1xi32>
    %16 = arith.addi %5, %15 : vector<32x1xi32>
    %17 = arith.select %14, %16, %5 : vector<32x1xi1>, vector<32x1xi32>
    %c0_i32_4 = arith.constant 0 : i32
    %18 = vector.broadcast %c0_i32_4 : i32 to vector<32x1xi32>
    %19 = arith.cmpi eq, %17, %18 : vector<32x1xi32>
    %c15_i32 = arith.constant 15 : i32
    %20 = vector.broadcast %c15_i32 : i32 to vector<32x1xi32>
    %21 = arith.cmpi eq, %17, %20 : vector<32x1xi32>
    %c0_5 = arith.constant 0 : index
    %c0_6 = arith.constant 0 : index
    %22 = vector.load %arg1[%c0_5, %c0_6] : memref<1x128xf32, #tpu.memory_space<vmem>>, vector<1x128xf32>
    %c0_7 = arith.constant 0 : index
    %c0_8 = arith.constant 0 : index
    %23 = vector.load %arg2[%c0_7, %c0_8] : memref<1x128xf32, #tpu.memory_space<vmem>>, vector<1x128xf32>
    %cst = arith.constant dense<0.000000e+00> : vector<128xf32>
    %24 = vector.multi_reduction <add>, %0, %cst [0] : vector<32x128xf32> to vector<128xf32>
    %25 = vector.shape_cast %24 : vector<128xf32> to vector<1x128xf32>
    %26 = arith.mulf %0, %0 : vector<32x128xf32>
    %cst_9 = arith.constant dense<0.000000e+00> : vector<128xf32>
    %27 = vector.multi_reduction <add>, %26, %cst_9 [0] : vector<32x128xf32> to vector<128xf32>
    %28 = vector.shape_cast %27 : vector<128xf32> to vector<1x128xf32>
    %29 = tpu.concatenate %25, %28 in 0 : vector<1x128xf32>, vector<1x128xf32> -> vector<2x128xf32>
    %c8_i32 = arith.constant 8 : i32
    %30 = tpu.dynamic_rotate %29 by %c8_i32 dim 1 : vector<2x128xf32>, i32 -> vector<2x128xf32>
    %31 = arith.addf %29, %30 : vector<2x128xf32>
    %c16_i32_10 = arith.constant 16 : i32
    %32 = tpu.dynamic_rotate %31 by %c16_i32_10 dim 1 : vector<2x128xf32>, i32 -> vector<2x128xf32>
    %33 = arith.addf %31, %32 : vector<2x128xf32>
    %c32_i32 = arith.constant 32 : i32
    %34 = tpu.dynamic_rotate %33 by %c32_i32 dim 1 : vector<2x128xf32>, i32 -> vector<2x128xf32>
    %35 = arith.addf %33, %34 : vector<2x128xf32>
    %c64_i32 = arith.constant 64 : i32
    %36 = tpu.dynamic_rotate %35 by %c64_i32 dim 1 : vector<2x128xf32>, i32 -> vector<2x128xf32>
    %37 = arith.addf %35, %36 : vector<2x128xf32>
    %38 = vector.extract_strided_slice %37 {offsets = [0, 0], sizes = [1, 128], strides = [1, 1]} : vector<2x128xf32> to vector<1x128xf32>
    %cst_11 = arith.constant 0.001953125 : f32
    %39 = vector.broadcast %cst_11 : f32 to vector<1x128xf32>
    %40 = arith.mulf %38, %39 : vector<1x128xf32>
    %41 = vector.extract_strided_slice %37 {offsets = [1, 0], sizes = [1, 128], strides = [1, 1]} : vector<2x128xf32> to vector<1x128xf32>
    %cst_12 = arith.constant 0.001953125 : f32
    %42 = vector.broadcast %cst_12 : f32 to vector<1x128xf32>
    %43 = arith.mulf %41, %42 : vector<1x128xf32>
    %44 = arith.mulf %40, %40 : vector<1x128xf32>
    %45 = arith.subf %43, %44 : vector<1x128xf32>
    %cst_13 = arith.constant 0.000000e+00 : f32
    %46 = vector.broadcast %cst_13 : f32 to vector<1x128xf32>
    %47 = arith.maximumf %45, %46 : vector<1x128xf32>
    %cst_14 = arith.constant 9.99999974E-6 : f32
    %48 = vector.broadcast %cst_14 : f32 to vector<1x128xf32>
    %49 = arith.addf %47, %48 : vector<1x128xf32>
    %50 = math.rsqrt %49 : vector<1x128xf32>
    %51 = arith.mulf %22, %50 : vector<1x128xf32>
    %52 = arith.mulf %40, %51 : vector<1x128xf32>
    %53 = arith.subf %23, %52 : vector<1x128xf32>
    %54 = vector.broadcast %51 : vector<1x128xf32> to vector<32x128xf32>
    %55 = arith.mulf %0, %54 : vector<32x128xf32>
    %56 = vector.broadcast %53 : vector<1x128xf32> to vector<32x128xf32>
    %57 = arith.addf %55, %56 : vector<32x128xf32>
    %cst_15 = arith.constant 0.000000e+00 : f32
    %58 = vector.broadcast %cst_15 : f32 to vector<32x128xf32>
    %59 = arith.cmpf oge, %57, %58 : vector<32x128xf32>
    %cst_16 = arith.constant 0.00999999977 : f32
    %60 = vector.broadcast %cst_16 : f32 to vector<32x128xf32>
    %61 = arith.mulf %60, %57 : vector<32x128xf32>
    %62 = arith.select %59, %57, %61 : vector<32x128xi1>, vector<32x128xf32>
    %c1_i32_17 = arith.constant 1 : i32
    %63 = tpu.dynamic_rotate %62 by %c1_i32_17 dim 0 : vector<32x128xf32>, i32 -> vector<32x128xf32>
    %cst_18 = arith.constant 0.000000e+00 : f32
    %64 = vector.shape_cast %19 : vector<32x1xi1> to vector<32x1xi1>
    %65 = vector.broadcast %64 : vector<32x1xi1> to vector<32x128xi1>
    %66 = vector.broadcast %cst_18 : f32 to vector<32x128xf32>
    %67 = arith.select %65, %66, %63 : vector<32x128xi1>, vector<32x128xf32>
    %c31_i32 = arith.constant 31 : i32
    %68 = tpu.dynamic_rotate %62 by %c31_i32 dim 0 : vector<32x128xf32>, i32 -> vector<32x128xf32>
    %cst_19 = arith.constant 0.000000e+00 : f32
    %69 = vector.shape_cast %21 : vector<32x1xi1> to vector<32x1xi1>
    %70 = vector.broadcast %69 : vector<32x1xi1> to vector<32x128xi1>
    %71 = vector.broadcast %cst_19 : f32 to vector<32x128xf32>
    %72 = arith.select %70, %71, %68 : vector<32x128xi1>, vector<32x128xf32>
    %73 = tpu.concatenate %67, %62, %72 in 1 : vector<32x128xf32>, vector<32x128xf32>, vector<32x128xf32> -> vector<32x384xf32>
    %c0_20 = arith.constant 0 : index
    %c0_21 = arith.constant 0 : index
    %74 = vector.load %arg5[%c0_20, %c0_21] : memref<384x128xf32, #tpu.memory_space<vmem>>, vector<384x128xf32>
    %cst_22 = arith.constant dense<0.000000e+00> : vector<32x128xf32>
    %75 = tpu.matmul %73, %74, %cst_22 {dimension_numbers = #tpu.dot_dimension_numbers<[1], [0], [0], [1], [0, 0, 1, 1], [], []>} : vector<32x384xf32>, vector<384x128xf32>, vector<32x128xf32> -> vector<32x128xf32>
    %c0_23 = arith.constant 0 : index
    %c0_24 = arith.constant 0 : index
    %76 = vector.load %arg3[%c0_23, %c0_24] : memref<1x128xf32, #tpu.memory_space<vmem>>, vector<1x128xf32>
    %c0_25 = arith.constant 0 : index
    %c0_26 = arith.constant 0 : index
    %77 = vector.load %arg4[%c0_25, %c0_26] : memref<1x128xf32, #tpu.memory_space<vmem>>, vector<1x128xf32>
    %cst_27 = arith.constant dense<0.000000e+00> : vector<128xf32>
    %78 = vector.multi_reduction <add>, %75, %cst_27 [0] : vector<32x128xf32> to vector<128xf32>
    %79 = vector.shape_cast %78 : vector<128xf32> to vector<1x128xf32>
    %80 = arith.mulf %75, %75 : vector<32x128xf32>
    %cst_28 = arith.constant dense<0.000000e+00> : vector<128xf32>
    %81 = vector.multi_reduction <add>, %80, %cst_28 [0] : vector<32x128xf32> to vector<128xf32>
    %82 = vector.shape_cast %81 : vector<128xf32> to vector<1x128xf32>
    %83 = tpu.concatenate %79, %82 in 0 : vector<1x128xf32>, vector<1x128xf32> -> vector<2x128xf32>
    %c8_i32_29 = arith.constant 8 : i32
    %84 = tpu.dynamic_rotate %83 by %c8_i32_29 dim 1 : vector<2x128xf32>, i32 -> vector<2x128xf32>
    %85 = arith.addf %83, %84 : vector<2x128xf32>
    %c16_i32_30 = arith.constant 16 : i32
    %86 = tpu.dynamic_rotate %85 by %c16_i32_30 dim 1 : vector<2x128xf32>, i32 -> vector<2x128xf32>
    %87 = arith.addf %85, %86 : vector<2x128xf32>
    %c32_i32_31 = arith.constant 32 : i32
    %88 = tpu.dynamic_rotate %87 by %c32_i32_31 dim 1 : vector<2x128xf32>, i32 -> vector<2x128xf32>
    %89 = arith.addf %87, %88 : vector<2x128xf32>
    %c64_i32_32 = arith.constant 64 : i32
    %90 = tpu.dynamic_rotate %89 by %c64_i32_32 dim 1 : vector<2x128xf32>, i32 -> vector<2x128xf32>
    %91 = arith.addf %89, %90 : vector<2x128xf32>
    %92 = vector.extract_strided_slice %91 {offsets = [0, 0], sizes = [1, 128], strides = [1, 1]} : vector<2x128xf32> to vector<1x128xf32>
    %cst_33 = arith.constant 0.001953125 : f32
    %93 = vector.broadcast %cst_33 : f32 to vector<1x128xf32>
    %94 = arith.mulf %92, %93 : vector<1x128xf32>
    %95 = vector.extract_strided_slice %91 {offsets = [1, 0], sizes = [1, 128], strides = [1, 1]} : vector<2x128xf32> to vector<1x128xf32>
    %cst_34 = arith.constant 0.001953125 : f32
    %96 = vector.broadcast %cst_34 : f32 to vector<1x128xf32>
    %97 = arith.mulf %95, %96 : vector<1x128xf32>
    %98 = arith.mulf %94, %94 : vector<1x128xf32>
    %99 = arith.subf %97, %98 : vector<1x128xf32>
    %cst_35 = arith.constant 0.000000e+00 : f32
    %100 = vector.broadcast %cst_35 : f32 to vector<1x128xf32>
    %101 = arith.maximumf %99, %100 : vector<1x128xf32>
    %cst_36 = arith.constant 9.99999974E-6 : f32
    %102 = vector.broadcast %cst_36 : f32 to vector<1x128xf32>
    %103 = arith.addf %101, %102 : vector<1x128xf32>
    %104 = math.rsqrt %103 : vector<1x128xf32>
    %105 = arith.mulf %76, %104 : vector<1x128xf32>
    %106 = arith.mulf %94, %105 : vector<1x128xf32>
    %107 = arith.subf %77, %106 : vector<1x128xf32>
    %108 = vector.broadcast %105 : vector<1x128xf32> to vector<32x128xf32>
    %109 = arith.mulf %75, %108 : vector<32x128xf32>
    %110 = vector.broadcast %107 : vector<1x128xf32> to vector<32x128xf32>
    %111 = arith.addf %109, %110 : vector<32x128xf32>
    %cst_37 = arith.constant 0.000000e+00 : f32
    %112 = vector.broadcast %cst_37 : f32 to vector<32x128xf32>
    %113 = arith.cmpf oge, %111, %112 : vector<32x128xf32>
    %cst_38 = arith.constant 0.00999999977 : f32
    %114 = vector.broadcast %cst_38 : f32 to vector<32x128xf32>
    %115 = arith.mulf %114, %111 : vector<32x128xf32>
    %116 = arith.select %113, %111, %115 : vector<32x128xi1>, vector<32x128xf32>
    %c1_i32_39 = arith.constant 1 : i32
    %117 = tpu.dynamic_rotate %116 by %c1_i32_39 dim 0 : vector<32x128xf32>, i32 -> vector<32x128xf32>
    %cst_40 = arith.constant 0.000000e+00 : f32
    %118 = vector.shape_cast %19 : vector<32x1xi1> to vector<32x1xi1>
    %119 = vector.broadcast %118 : vector<32x1xi1> to vector<32x128xi1>
    %120 = vector.broadcast %cst_40 : f32 to vector<32x128xf32>
    %121 = arith.select %119, %120, %117 : vector<32x128xi1>, vector<32x128xf32>
    %c31_i32_41 = arith.constant 31 : i32
    %122 = tpu.dynamic_rotate %116 by %c31_i32_41 dim 0 : vector<32x128xf32>, i32 -> vector<32x128xf32>
    %cst_42 = arith.constant 0.000000e+00 : f32
    %123 = vector.shape_cast %21 : vector<32x1xi1> to vector<32x1xi1>
    %124 = vector.broadcast %123 : vector<32x1xi1> to vector<32x128xi1>
    %125 = vector.broadcast %cst_42 : f32 to vector<32x128xf32>
    %126 = arith.select %124, %125, %122 : vector<32x128xi1>, vector<32x128xf32>
    %127 = tpu.concatenate %121, %116, %126 in 1 : vector<32x128xf32>, vector<32x128xf32>, vector<32x128xf32> -> vector<32x384xf32>
    %c0_43 = arith.constant 0 : index
    %c0_44 = arith.constant 0 : index
    %128 = vector.load %arg6[%c0_43, %c0_44] : memref<384x128xf32, #tpu.memory_space<vmem>>, vector<384x128xf32>
    %cst_45 = arith.constant dense<0.000000e+00> : vector<32x128xf32>
    %129 = tpu.matmul %127, %128, %cst_45 {dimension_numbers = #tpu.dot_dimension_numbers<[1], [0], [0], [1], [0, 0, 1, 1], [], []>} : vector<32x384xf32>, vector<384x128xf32>, vector<32x128xf32> -> vector<32x128xf32>
    %130 = arith.addf %0, %129 : vector<32x128xf32>
    %c0_46 = arith.constant 0 : index
    %c0_47 = arith.constant 0 : index
    %131 = vector.load %arg7[%c0_46, %c0_47] : memref<32x128xf32, #tpu.memory_space<vmem>>, vector<32x128xf32>
    tpu.vector_store %arg7[%c0_46, %c0_47], %130 {strides = array<i32>} : memref<32x128xf32, #tpu.memory_space<vmem>>, vector<32x128xf32>,
    return
  }
}

</mosaic_0001>

<bundles_post_ra>
// kernel: tpu_custom_call.1
= control target key start
LH: loop header
LB: loop body
LE: loop exit
PB: predicated region body
PF: predicated region fallthrough
CT: control target
= control target key end

     0   :  { %12 = vsyncpa [#allocation3], 0  ;;  %s1603_s0 = inlined_call_operand.hbm [shape: f32[32,128], index: 0, kind: input, shape index: {}]   ;;  %s1604_s1 = inlined_call_operand.vmem [shape: f32[1,128], index: 1, kind: input, shape index: {}]   ;;  %s1605_s2 = inlined_call_operand.vmem [shape: f32[1,128], index: 2, kind: input, shape index: {}]   ;;  %s1606_s3 = inlined_call_operand.vmem [shape: f32[1,128], index: 3, kind: input, shape index: {}]   ;;  %s1607_s4 = inlined_call_operand.vmem [shape: f32[1,128], index: 4, kind: input, shape index: {}]   ;;  %s1608_s5 = inlined_call_operand.hbm [shape: f32[384,128], index: 5, kind: input, shape index: {}]   ;;  %s1609_s6 = inlined_call_operand.hbm [shape: f32[384,128], index: 6, kind: input, shape index: {}]   ;;  %s1610_s7 = inlined_call_operand.hbm [shape: f32[32,128], index: 7, kind: output, shape index: {}]  }
   0x1   :  { %13 = vsyncpa [#allocation6], 0 }
   0x2   :  { %14 = vsyncpa [#allocation4], 0  ;;  %s1318_s24 = smov [#allocation5]   ;;  %s1319_s26 = smov [#allocation2]  }
   0x3   :  { %s40_s25 = sshll.u32 %s1318_s24, 4  ;;  %s20_s27 = sshll.u32 %s1319_s26, 4  ;;  %s41_s25 = int_to_ptr.vmem [resolvable:$true] %s40_s25  ;;  %s1368_s27 = int_to_ptr.vmem [resolvable:$true] %s20_s27 }
   0x4   :  { %s1224_s30 = scalar_lea.hbm %s1608_s5, 6144 }
   0x5   :  { %p1225_p0 = scmp.ne.s32.totalorder %s1608_s5, %s1224_s30  ;;  %p1228_p1 = scmp.lt.u32.totalorder %s1224_s30, %s1608_s5 }
   0x7   :  { %p1230_p2 = pnand %p1228_p1, %p1225_p0 }
   0x9   :  { %1233 = shalt.err (!%p1230_p2)
}
   0xa   :  { %s1234_s12 = scalar_lea.vmem %s41_s25, 6144  ;;  %p1239_p4 = scmp.lt.s32.totalorder %s41_s25, %s41_s25 }
   0xb   :  { %p1235_p3 = scmp.ne.s32.totalorder %s41_s25, %s1234_s12  ;;  %p1240_p5 = scmp.lt.s32.totalorder %s1234_s12, %s1234_s12 }
   0xd   :  { %p1241_p6 = por %p1240_p5, %p1239_p4 }
   0xf   :  { %p1242_p7 = pnand %p1241_p6, %p1235_p3 }
  0x11   :  { %1245 = shalt.err (!%p1242_p7)
}
  0x12   :  { %s1320_s13 = smov 128   ;;  %s1321_s14 = smov 8  }
  0x13   :  { %46 = dma.hbm_to_vmem [thread:$0]  %s1608_s5, 6144, %s41_s25, [#allocation6], %s1320_s13, %s1320_s13, %s1321_s14  }
  0x14   :  { %s1246_s19 = scalar_lea.hbm %s1603_s0, 512 }
  0x15   :  { %p1247_p8 = scmp.ne.s32.totalorder %s1603_s0, %s1246_s19  ;;  %p1250_p9 = scmp.lt.u32.totalorder %s1246_s19, %s1603_s0 }
  0x17   :  { %p1252_p10 = pnand %p1250_p9, %p1247_p8 }
  0x19   :  { %1255 = shalt.err (!%p1252_p10)
}
  0x1a   :  { %s1256_s24 = scalar_lea.vmem %s1368_s27, 512  ;;  %p1261_p12 = scmp.lt.s32.totalorder %s1368_s27, %s1368_s27 }
  0x1b   :  { %p1257_p11 = scmp.ne.s32.totalorder %s1368_s27, %s1256_s24  ;;  %p1262_p13 = scmp.lt.s32.totalorder %s1256_s24, %s1256_s24 }
  0x1d   :  { %p1263_p0 = por %p1262_p13, %p1261_p12 }
  0x1f   :  { %p1264_p1 = pnand %p1263_p0, %p1257_p11 }
  0x21   :  { %1267 = shalt.err (!%p1264_p1)
}
  0x22   :  { %26 = dma.hbm_to_vmem [thread:$0]  %s1603_s0, 512, %s1368_s27, [#allocation3], %s1320_s13, %s1320_s13, %s1321_s14  }
  0x23   :  { %s1322_s26 = smov [#allocation7]   ;;  %s1268_s8 = scalar_lea.hbm %s1609_s6, 6144 }
  0x24   :  { %s52_s28 = sshll.u32 %s1322_s26, 4  ;;  %p1269_p2 = scmp.ne.s32.totalorder %s1609_s6, %s1268_s8  ;;  %s53_s28 = int_to_ptr.vmem [resolvable:$true] %s52_s28 }
  0x25   :  { %p1272_p3 = scmp.lt.u32.totalorder %s1268_s8, %s1609_s6 }
  0x27   :  { %p1274_p4 = pnand %p1272_p3, %p1269_p2 }
  0x29   :  { %1277 = shalt.err (!%p1274_p4)
}
  0x2a   :  { %s1278_s15 = scalar_lea.vmem %s53_s28, 6144  ;;  %p1283_p6 = scmp.lt.s32.totalorder %s53_s28, %s53_s28 }
  0x2b   :  { %p1279_p5 = scmp.ne.s32.totalorder %s53_s28, %s1278_s15  ;;  %p1284_p7 = scmp.lt.s32.totalorder %s1278_s15, %s1278_s15 }
  0x2d   :  { %p1285_p8 = por %p1284_p7, %p1283_p6 }
  0x2f   :  { %p1286_p9 = pnand %p1285_p8, %p1279_p5 }
  0x31   :  { %1289 = shalt.err (!%p1286_p9)
}
  0x32   :  { %58 = dma.hbm_to_vmem [thread:$0]  %s1609_s6, 6144, %s53_s28, [#allocation6], %s1320_s13, %s1320_s13, %s1321_s14  }
  0x33   :  { %1312 = dma.done.wait [#allocation3], 512  }
  0x34   :  { %1313 = vsyncadd [#allocation3], 4294966784 }
  0x35   :  { %1314 = dma.done.wait [#allocation6], 12288  }
  0x36   :  { %1315 = vsyncadd [#allocation6], 4294955008  ;;  %v1420_v0 = vld [vmem:[#allocation2] sm:$0xff]  ;;  %v1422_v1 = vld [vmem:[#allocation2 + $0x8] sm:$0xff]  ;;  %vm157_vm0 = vcmask 1040384   ;;  %s1323_s6 = smov 16  }
  0x37   :  { %v1424_v2 = vld [vmem:[#allocation2 + $0x10] sm:$0xff]  ;;  %v1426_v3 = vld [vmem:[#allocation2 + $0x18] sm:$0xff]  ;;  %v135_v4 = vadd.f32 %v1422_v1, %v1420_v0  ;;  %v144_v5 = vmul.f32 %v1420_v0, %v1420_v0  ;;  %v145_v6 = vmul.f32 %v1422_v1, %v1422_v1  ;;  %s1324_s16 = smov 32   ;;  %v290_v33 = vld [vmem:[#allocation5 + $0x80] sm:$0xff]  ;;  %s1325_s17 = smov 64  }
  0x38   :  { %v146_v7 = vmul.f32 %v1424_v2, %v1424_v2  ;;  %v147_v9 = vmul.f32 %v1426_v3, %v1426_v3  ;;  %v291_v34 = vld [vmem:[#allocation5 + $0x88] sm:$0xff]  ;;  %v274_v36 = vld [vmem:[#allocation5] sm:$0xff]  ;;  %v292_v42 = vld [vmem:[#allocation5 + $0x90] sm:$0xff] }
  0x39   :  { %v136_v8 = vadd.f32 %v135_v4, %v1424_v2  ;;  %v148_v10 = vadd.f32 %v145_v6, %v144_v5  ;;  %v1082_v35 = vpack.c.bf16 %v291_v34, %v290_v33  ;;  %v275_v37 = vld [vmem:[#allocation5 + $0x8] sm:$0xff]  ;;  %v306_v38 = vld [vmem:[#allocation5 + $0x100] sm:$0xff]  ;;  %v293_v43 = vld [vmem:[#allocation5 + $0x98] sm:$0xff] }
  0x3a   :  { %v1084_v39 = vpack.c.bf16 %v275_v37, %v274_v36  ;;  %v307_v40 = vld [vmem:[#allocation5 + $0x108] sm:$0xff]  ;;  %v1086_v44 = vpack.c.bf16 %v293_v43, %v292_v42  ;;  %v276_v45 = vld [vmem:[#allocation5 + $0x10] sm:$0xff]  ;;  %v277_v46 = vld [vmem:[#allocation5 + $0x18] sm:$0xff] }
  0x3b   :  { %v137_v11 = vadd.f32 %v136_v8, %v1426_v3  ;;  %v149_v12 = vadd.f32 %v148_v10, %v146_v7  ;;  %1083 = vmatprep.subr.bf16.mxu0 %v1082_v35  ;;  %v1114_v41 = vpack.c.bf16 %v307_v40, %v306_v38  ;;  %v308_v47 = vld [vmem:[#allocation5 + $0x110] sm:$0xff]  ;;  %v1088_v48 = vpack.c.bf16 %v277_v46, %v276_v45  ;;  %v309_v49 = vld [vmem:[#allocation5 + $0x118] sm:$0xff]  ;;  %v294_v51 = vld [vmem:[#allocation5 + $0xa0] sm:$0xff] }
  0x3c   :  { %1085 = vmatpush3.bf16.msra.mxu0 %v1084_v39  ;;  %v1118_v50 = vpack.c.bf16 %v309_v49, %v308_v47  ;;  %v295_v52 = vld [vmem:[#allocation5 + $0xa8] sm:$0xff]  ;;  %v278_v54 = vld [vmem:[#allocation5 + $0x20] sm:$0xff]  ;;  %v296_v60 = vld [vmem:[#allocation5 + $0xb0] sm:$0xff] }
  0x3d   :  { %v138_v13 = vrot.slane %v137_v11, 4  ;;  %v150_v14 = vadd.f32 %v149_v12, %v147_v9  ;;  %1115 = vmatprep.subr.bf16.mxu1 %v1114_v41  ;;  %1087 = vmatprep.subr.bf16.mxu0 %v1086_v44  ;;  %v1090_v53 = vpack.c.bf16 %v295_v52, %v294_v51  ;;  %v279_v55 = vld [vmem:[#allocation5 + $0x28] sm:$0xff]  ;;  %v310_v56 = vld [vmem:[#allocation5 + $0x120] sm:$0xff]  ;;  %v297_v61 = vld [vmem:[#allocation5 + $0xb8] sm:$0xff] }
  0x3e   :  { %1117 = vmatpush3.bf16.msra.mxu1 %v1114_v41  ;;  %v1092_v57 = vpack.c.bf16 %v279_v55, %v278_v54  ;;  %v311_v58 = vld [vmem:[#allocation5 + $0x128] sm:$0xff]  ;;  %v1094_v62 = vpack.c.bf16 %v297_v61, %v296_v60  ;;  %v280_v63 = vld [vmem:[#allocation5 + $0x30] sm:$0xff]  ;;  %v281_v4 = vld [vmem:[#allocation5 + $0x38] sm:$0xff]  ;;  %v72_v54 = vlaneseq  ;;  %v1326_v55 = vmov 1966171168  }
  0x3f   :  { %v139_v15 = vadd.f32 %v138_v13, %v137_v11  ;;  %v151_v16 = vrot.slane %v150_v14, 4  ;;  %1119 = vmatprep.subr.bf16.mxu1 %v1118_v50  ;;  %v1122_v59 = vpack.c.bf16 %v311_v58, %v310_v56  ;;  %v312_v5 = vld [vmem:[#allocation5 + $0x130] sm:$0xff]  ;;  %v1096_v6 = vpack.c.bf16 %v281_v4, %v280_v63  ;;  %v313_v7 = vld [vmem:[#allocation5 + $0x138] sm:$0xff]  ;;  %v298_v9 = vld [vmem:[#allocation5 + $0xc0] sm:$0xff] }
  0x40   :  { %1089 = vmatpush3.bf16.msra.mxu0 %v1088_v48  ;;  %v1126_v8 = vpack.c.bf16 %v313_v7, %v312_v5  ;;  %v299_v10 = vld [vmem:[#allocation5 + $0xc8] sm:$0xff]  ;;  %v282_v12 = vld [vmem:[#allocation5 + $0x40] sm:$0xff]  ;;  %v304_v36 = vld [vmem:[#allocation5 + $0xf0] sm:$0xff]  ;;  %v182_v56 = vunpack.c.l.s4 %v1326_v55 }
  0x41   :  { %v140_v17 = vrot.slane %v139_v15, 2  ;;  %v152_v18 = vadd.f32 %v151_v16, %v150_v14  ;;  %1091 = vmatprep.subr.bf16.mxu0 %v1090_v53  ;;  %v1098_v11 = vpack.c.bf16 %v299_v10, %v298_v9  ;;  %v283_v13 = vld [vmem:[#allocation5 + $0x48] sm:$0xff]  ;;  %v314_v14 = vld [vmem:[#allocation5 + $0x140] sm:$0xff]  ;;  %v305_v37 = vld [vmem:[#allocation5 + $0xf8] sm:$0xff] }
  0x42   :  { %1121 = vmatpush3.bf16.msra.mxu1 %v1118_v50  ;;  %v315_v16 = vld [vmem:[#allocation5 + $0x148] sm:$0xff]  ;;  %v318_v33 = vld [vmem:[#allocation5 + $0x160] sm:$0xff]  ;;  %v1110_v39 = vpack.c.bf16 %v305_v37, %v304_v36  ;;  %v288_v40 = vld [vmem:[#allocation5 + $0x70] sm:$0xff]  ;;  %v183_v58 = vunpack.c.0.s8 %v182_v56 }
  0x43   :  { %v141_v19 = vadd.f32 %v140_v17, %v139_v15  ;;  %v153_v20 = vrot.slane %v152_v18, 2  ;;  %1123 = vmatprep.subr.bf16.mxu1 %v1122_v59  ;;  %v1100_v15 = vpack.c.bf16 %v283_v13, %v282_v12  ;;  %v1130_v17 = vpack.c.bf16 %v315_v16, %v314_v14  ;;  %v319_v35 = vld [vmem:[#allocation5 + $0x168] sm:$0xff]  ;;  %v289_v41 = vld [vmem:[#allocation5 + $0x78] sm:$0xff]  ;;  %v320_v43 = vld [vmem:[#allocation5 + $0x170] sm:$0xff] }
  0x44   :  { %1093 = vmatpush3.bf16.msra.mxu0 %v1092_v57  ;;  %v1138_v38 = vpack.c.bf16 %v319_v35, %v318_v33  ;;  %v1112_v42 = vpack.c.bf16 %v289_v41, %v288_v40  ;;  %v321_v44 = vld [vmem:[#allocation5 + $0x178] sm:$0xff]  ;;  %v1449_v57 = vshrl.u32 %v72_v54, 7 }
  0x45   :  { %v142_v21 = vrot.slane %v141_v19, 1  ;;  %v154_v22 = vadd.f32 %v153_v20, %v152_v18  ;;  %1095 = vmatprep.subr.bf16.mxu0 %v1094_v62  ;;  %v300_v18 = vld [vmem:[#allocation5 + $0xd0] sm:$0xff]  ;;  %v1142_v45 = vpack.c.bf16 %v321_v44, %v320_v43  ;;  %v133_v62 = vld [vmem:[%s1604_s1] sm:$0x1] }
  0x46   :  { %1125 = vmatpush3.bf16.msra.mxu1 %v1122_v59  ;;  %v1452_v59 = vsub.s32 %v183_v58, %v1449_v57  ;;  %v1459_v63 = vsub.s32 0, %v1449_v57  ;;  %v74_v12 = vadd.s32 8, %v1449_v57  ;;  %vm236_vm1 = vcmp.lt.s32.totalorder %v1449_v57, 1 }
  0x47   :  { %v143_v23 = vadd.f32 %v142_v21, %v141_v19  ;;  %v155_v24 = vrot.slane %v154_v22, 1  ;;  %1127 = vmatprep.subr.bf16.mxu1 %v1126_v8  ;;  %v301_v19 = vld [vmem:[#allocation5 + $0xd8] sm:$0xff]  ;;  %v284_v21 = vld [vmem:[#allocation5 + $0x50] sm:$0xff]  ;;  %vm257_vm7 = vcmp.lt.s32.totalorder %v1449_v57, 7 }
  0x48   :  { %1097 = vmatpush3.bf16.msra.mxu0 %v1096_v6  ;;  %v1102_v20 = vpack.c.bf16 %v301_v19, %v300_v18  ;;  %v134_v6 = vld [vmem:[%s1605_s2] sm:$0x1] }
  0x49   :  { %v156_v25 = vadd.f32 %v155_v24, %v154_v22  ;;  %1099 = vmatprep.subr.bf16.mxu0 %v1098_v11  ;;  %v285_v22 = vld [vmem:[#allocation5 + $0x58] sm:$0xff]  ;;  %v81_v11 = vand.u32 15, %v1449_v57 }
  0x4a   :  { %1129 = vmatpush3.bf16.msra.mxu1 %v1126_v8  ;;  %v1104_v24 = vpack.c.bf16 %v285_v22, %v284_v21  ;;  %v88_v22 = vand.u32 15, %v74_v12 }
  0x4b   :  { %v158_v26 = vsel %vm157_vm0, %v143_v23, %v156_v25  ;;  %1131 = vmatprep.subr.bf16.mxu1 %v1130_v17  ;;  %v316_v23 = vld [vmem:[#allocation5 + $0x150] sm:$0xff]  ;;  %v317_v25 = vld [vmem:[#allocation5 + $0x158] sm:$0xff]  ;;  %vm1474_vm2 = vcmp.ne.s32.totalorder %v81_v11, 0 }
  0x4c   :  { %159 = vrot.lane.b32.xlu0 %v158_v26, %s1321_s14  ;;  %1101 = vmatpush3.bf16.msra.mxu0 %v1100_v15  ;;  %vm1481_vm8 = vcmp.ne.s32.totalorder %v88_v22, 15 }
  0x4d   :  { %1103 = vmatprep.subr.bf16.mxu0 %v1102_v20 }
  0x4e   :  { %1133 = vmatpush3.bf16.msra.mxu1 %v1130_v17 }
  0x50   :  { %1105 = vmatpush3.bf16.msra.mxu0 %v1104_v24 }
  0xbe   :  { %v160_v27 = vpop.permute.xlu0 %159 }
  0xbf   :  { %v161_v28 = vadd.f32 %v160_v27, %v158_v26  ;;  %v1134_v26 = vpack.c.bf16 %v317_v25, %v316_v23  ;;  %v302_v27 = vld [vmem:[#allocation5 + $0xe0] sm:$0xff]  ;;  %v76_v23 = vadd.s32 24, %v1449_v57 }
  0xc1   :  { %162 = vrot.lane.b32.xlu0 %v161_v28, %s1323_s6  ;;  %1135 = vmatprep.subr.bf16.mxu1 %v1134_v26  ;;  %v102_v43 = vand.u32 15, %v76_v23 }
  0xc2   :  { %1137 = vmatpush3.bf16.msra.mxu1 %v1134_v26 }
  0xc3   :  { %1139 = vmatprep.subr.bf16.mxu1 %v1138_v38  ;;  %vm1499_vm9 = vcmp.ne.s32.totalorder %v102_v43, 15 }
  0xc6   :  { %1141 = vmatpush3.bf16.msra.mxu1 %v1138_v38 }
  0xc7   :  { %1143 = vmatprep.subr.bf16.mxu1 %v1142_v45 }
  0xca   :  { %1145 = vmatpush3.bf16.msra.mxu1 %v1142_v45 }
 0x133   :  { %v163_v29 = vpop.permute.xlu0 %162 }
 0x134   :  { %v164_v30 = vadd.f32 %v163_v29, %v161_v28  ;;  %v303_v28 = vld [vmem:[#allocation5 + $0xe8] sm:$0xff] }
 0x135   :  { %v1106_v29 = vpack.c.bf16 %v303_v28, %v302_v27 }
 0x136   :  { %165 = vrot.lane.b32.xlu1 %v164_v30, %s1324_s16 }
 0x137   :  { %1107 = vmatprep.subr.bf16.mxu0 %v1106_v29 }
 0x1a8   :  { %v166_v31 = vpop.permute.xlu1 %165 }
 0x1a9   :  { %v1444_v32 = vadd.f32 %v166_v31, %v164_v30  ;;  %v286_v30 = vld [vmem:[#allocation5 + $0x60] sm:$0xff]  ;;  %v287_v31 = vld [vmem:[#allocation5 + $0x68] sm:$0xff] }
 0x1aa   :  { %v1108_v34 = vpack.c.bf16 %v287_v31, %v286_v30  ;;  %v75_v30 = vadd.s32 16, %v1449_v57 }
 0x1ab   :  { %168 = vrot.lane.b32.xlu1 %v1444_v32, %s1325_s17 }
 0x1ac   :  { %1109 = vmatpush3.bf16.msra.mxu0 %v1108_v34 }
 0x1ad   :  { %1111 = vmatprep.subr.bf16.mxu0 %v1110_v39 }
 0x1b0   :  { %1113 = vmatpush3.bf16.msra.mxu0 %v1112_v42 }
 0x21d   :  { %v169_v46 = vpop.permute.xlu1 %168 }
 0x21e   :  { %v170_v47 = vadd.f32 %v169_v46, %v1444_v32  ;;  %v95_v46 = vand.u32 15, %v75_v30 }
 0x220   :  { %v171_v48 = vmul.f32 0.001953125, %v170_v47  ;;  %vm1505_vm10 = vcmp.ne.s32.totalorder %v95_v46, 0 }
 0x222   :  { %v172_v49 = vmul.f32 %v171_v48, %v171_v48 }
 0x224   :  { %v174_v50 = vrot.slane %v172_v49, 7 }
 0x226   :  { %v176_v51 = vsub.f32 %v171_v48, %v174_v50 }
 0x228   :  { %v177_v52 = vmax.f32 %v176_v51, 0.0 }
 0x22a   :  { %v178_v53 = vadd.f32 1e-05, %v177_v52 }
 0x22c   :  { %1220 = vrsqrt.f32 %v178_v53 }
 0x236   :  { %v1221_v60 = vpop.eup %1220 }
 0x237   :  { %v187_v61 = vrot.slane %v1221_v60, %v1452_v59 }
 0x239   :  { %v188_v32 = vcombine.high %v187_v61, %v187_v61 }
 0x23b   :  { %v195_v4 = vrot.slane %v188_v32, %v1452_v59 }
 0x23d   :  { %v197_v5 = vmul.f32 %v195_v4, %v133_v62 }
 0x23f   :  { %v198_v7 = vmul.f32 %v197_v5, %v171_v48  ;;  %v204_v8 = vrot.slane %v197_v5, %v1459_v63 }
 0x241   :  { %v199_v9 = vsub.f32 %v134_v6, %v198_v7  ;;  %v206_v10 = vmul.f32 %v204_v8, %v1420_v0  ;;  %v209_v14 = vmul.f32 %v204_v8, %v1426_v3  ;;  %v207_v15 = vmul.f32 %v204_v8, %v1422_v1 }
 0x242   :  { %v208_v16 = vmul.f32 %v204_v8, %v1424_v2 }
 0x243   :  { %v214_v13 = vrot.slane %v199_v9, %v1459_v63 }
 0x245   :  { %v216_v17 = vadd.f32 %v214_v13, %v206_v10  ;;  %v219_v18 = vadd.f32 %v214_v13, %v209_v14  ;;  %v217_v19 = vadd.f32 %v214_v13, %v207_v15  ;;  %v218_v20 = vadd.f32 %v214_v13, %v208_v16 }
 0x247   :  { %vm220_vm3 = vcmp.ge.f32.partialorder %v216_v17, 0.0  ;;  %v224_v24 = vmul.f32 0.01, %v216_v17  ;;  %vm223_vm4 = vcmp.ge.f32.partialorder %v219_v18, 0.0  ;;  %v227_v25 = vmul.f32 0.01, %v219_v18 }
 0x248   :  { %vm221_vm5 = vcmp.ge.f32.partialorder %v217_v19, 0.0  ;;  %v225_v26 = vmul.f32 0.01, %v217_v19  ;;  %vm222_vm6 = vcmp.ge.f32.partialorder %v218_v20, 0.0  ;;  %v226_v27 = vmul.f32 0.01, %v218_v20 }
 0x249   :  { %v228_v28 = vsel %vm220_vm3, %v216_v17, %v224_v24  ;;  %v231_v29 = vsel %vm223_vm4, %v219_v18, %v227_v25 }
 0x24a   :  { %v232_v31 = vrot.slane %v228_v28, 7  ;;  %v253_v33 = vrot.slane %v228_v28, 1  ;;  %386 = vmatprep.mubr.f32.mxu0 %v228_v28  ;;  %v235_v34 = vrot.slane %v231_v29, 7  ;;  %v229_v35 = vsel %vm221_vm5, %v217_v19, %v225_v26 }
 0x24b   :  { %v254_v36 = vrot.slane %v229_v35, 1  ;;  %v230_v37 = vsel %vm222_vm6, %v218_v20, %v226_v27  ;;  %v256_v39 = vrot.slane %v231_v29, 1  ;;  %v233_v42 = vrot.slane %v229_v35, 7 }
 0x24c   :  { %v240_v40 = vsel %vm236_vm1, %v235_v34, %v232_v31  ;;  %v255_v41 = vrot.slane %v230_v37, 1  ;;  %v234_v50 = vrot.slane %v230_v37, 7 }
 0x24d   :  { %859 = vmatmul.mubr.msk.f32.vlgmr.msra.gmra.mrb[0].mxu0 %vm1474_vm2, %v240_v40  ;;  %v260_v44 = vsel %vm257_vm7, %v253_v33, %v254_v36  ;;  %v239_v48 = vsel %vm236_vm1, %v232_v31, %v233_v42  ;;  %v261_v51 = vsel %vm257_vm7, %v256_v39, %v253_v33 }
 0x24e   :  { %1038 = vmatprep.mubr.f32.mxu1 %v260_v44  ;;  %391 = vmatprep.mubr.f32.mxu0 %v229_v35  ;;  %v259_v45 = vsel %vm257_vm7, %v254_v36, %v255_v41  ;;  %v258_v47 = vsel %vm257_vm7, %v255_v41, %v256_v39  ;;  %v238_v53 = vsel %vm236_vm1, %v233_v42, %v234_v50 }
 0x24f   :  { %1039 = vmatmul.mubr.msk.f32.vlgmr.msra.gmra.mrb[0].mxu1 %vm1481_vm8, %v259_v45  ;;  %v237_v54 = vsel %vm236_vm1, %v234_v50, %v235_v34  ;;  %v630_v50 = vld [vmem:[#allocation7 + $0x80] sm:$0xff] }
 0x250   :  { %1041 = vmatprep.mubr.f32.mxu1 %v258_v47 }
 0x251   :  { %392 = vmatmul.mubr.f32.gmra.mrb[2].mxu0 %v239_v48 }
 0x252   :  { %396 = vmatprep.mubr.f32.mxu0 %v230_v37 }
 0x253   :  { %1042 = vmatmul.mubr.msk.f32.gmra.mrb[2].mxu1 %vm1499_vm9, %v261_v51  ;;  %v631_v51 = vld [vmem:[#allocation7 + $0x88] sm:$0xff] }
 0x255   :  { %861 = vmatmul.mubr.msk.f32.gmra.mrb[4].mxu0 %vm1505_vm10, %v238_v53  ;;  %v1146_v53 = vpack.c.bf16 %v631_v51, %v630_v50  ;;  %v624_v50 = vld [vmem:[#allocation7 + $0x50] sm:$0xff]  ;;  %v625_v51 = vld [vmem:[#allocation7 + $0x58] sm:$0xff] }
 0x256   :  { %401 = vmatprep.mubr.f32.mxu0 %v231_v29 }
 0x257   :  { %1147 = vmatprep.subr.bf16.mxu0 %v1146_v53  ;;  %v656_v53 = vld [vmem:[#allocation7 + $0x150] sm:$0xff] }
 0x259   :  { %402 = vmatmul.mubr.f32.gmra.mrb[6].mxu0 %v237_v54  ;;  %v614_v54 = vld [vmem:[#allocation7] sm:$0xff] }
 0x320   :  { %v910_v55 = vpop.f32.mrb[0].mxu0 }
 0x321   :  { %v911_v56 = vpop.f32.mrb[1].mxu0 }
 0x322   :  { %v912_v58 = vadd.f32 %v911_v56, %v910_v55  ;;  %v1040_v60 = vpop.f32.mrb[0].mxu1  ;;  %v615_v55 = vld [vmem:[#allocation7 + $0x8] sm:$0xff]  ;;  %v646_v56 = vld [vmem:[#allocation7 + $0x100] sm:$0xff] }
 0x323   :  { %v473_v61 = vpop.f32.mrb[1].mxu1 }
 0x324   :  { %v1517_v32 = vadd.f32 %v912_v58, %v473_v61  ;;  %v913_v62 = vpop.f32.mrb[2].mxu0  ;;  %v1148_v58 = vpack.c.bf16 %v615_v55, %v614_v54  ;;  %v1168_v54 = vpack.c.bf16 %v625_v51, %v624_v50  ;;  %v657_v55 = vld [vmem:[#allocation7 + $0x158] sm:$0xff] }
 0x325   :  { %v914_v4 = vpop.f32.mrb[3].mxu0 }
 0x326   :  { %v915_v5 = vadd.f32 %v914_v4, %v913_v62  ;;  %v1043_v6 = vpop.f32.mrb[2].mxu1  ;;  %v503_v16 = vmul.f32 %v1517_v32, %v1517_v32  ;;  %1149 = vmatpush3.bf16.msra.mxu0 %v1148_v58  ;;  %v632_v62 = vld [vmem:[#allocation7 + $0x90] sm:$0xff]  ;;  %v633_v4 = vld [vmem:[#allocation7 + $0x98] sm:$0xff]  ;;  %v642_v58 = vld [vmem:[#allocation7 + $0xe0] sm:$0xff] }
 0x327   :  { %v483_v7 = vpop.f32.mrb[3].mxu1 }
 0x328   :  { %v1519_v8 = vadd.f32 %v1040_v60, %v915_v5  ;;  %v916_v9 = vpop.f32.mrb[4].mxu0  ;;  %v647_v60 = vld [vmem:[#allocation7 + $0x108] sm:$0xff]  ;;  %v1150_v5 = vpack.c.bf16 %v633_v4, %v632_v62 }
 0x329   :  { %v917_v10 = vpop.f32.mrb[5].mxu0  ;;  %v1178_v61 = vpack.c.bf16 %v647_v60, %v646_v56  ;;  %v1198_v56 = vpack.c.bf16 %v657_v55, %v656_v53  ;;  %v643_v60 = vld [vmem:[#allocation7 + $0xe8] sm:$0xff] }
 0x32a   :  { %v918_v11 = vadd.f32 %v917_v10, %v916_v9  ;;  %v504_v12 = vmul.f32 %v1519_v8, %v1519_v8  ;;  %v494_v17 = vadd.f32 %v1519_v8, %v1517_v32  ;;  %v648_v9 = vld [vmem:[#allocation7 + $0x110] sm:$0xff]  ;;  %1151 = vmatprep.subr.bf16.mxu0 %v1150_v5  ;;  %v1170_v62 = vpack.c.bf16 %v643_v60, %v642_v58  ;;  %v627_v4 = vld [vmem:[#allocation7 + $0x68] sm:$0xff]  ;;  %v658_v5 = vld [vmem:[#allocation7 + $0x160] sm:$0xff] }
 0x32b   :  { %1179 = vmatprep.subr.bf16.mxu1 %v1178_v61 }
 0x32c   :  { %v1523_v13 = vadd.f32 %v918_v11, %v483_v7  ;;  %v919_v14 = vpop.f32.mrb[6].mxu0  ;;  %v507_v20 = vadd.f32 %v504_v12, %v503_v16  ;;  %v617_v7 = vld [vmem:[#allocation7 + $0x18] sm:$0xff]  ;;  %1181 = vmatpush3.bf16.msra.mxu1 %v1178_v61  ;;  %v626_v61 = vld [vmem:[#allocation7 + $0x60] sm:$0xff] }
 0x32d   :  { %v920_v15 = vpop.f32.mrb[7].mxu0  ;;  %v649_v11 = vld [vmem:[#allocation7 + $0x118] sm:$0xff] }
 0x32e   :  { %v505_v18 = vmul.f32 %v1523_v13, %v1523_v13  ;;  %v921_v19 = vadd.f32 %v920_v15, %v919_v14  ;;  %v495_v22 = vadd.f32 %v494_v17, %v1523_v13  ;;  %v1182_v12 = vpack.c.bf16 %v649_v11, %v648_v9  ;;  %v634_v14 = vld [vmem:[#allocation7 + $0xa0] sm:$0xff]  ;;  %v635_v15 = vld [vmem:[#allocation7 + $0xa8] sm:$0xff]  ;;  %v645_v11 = vld [vmem:[#allocation7 + $0xf8] sm:$0xff] }
 0x32f   :  { %v1154_v16 = vpack.c.bf16 %v635_v15, %v634_v14  ;;  %v618_v17 = vld [vmem:[#allocation7 + $0x20] sm:$0xff]  ;;  %v629_v15 = vld [vmem:[#allocation7 + $0x78] sm:$0xff] }
 0x330   :  { %v1532_v23 = vadd.f32 %v1043_v6, %v921_v19  ;;  %v508_v24 = vadd.f32 %v507_v20, %v505_v18  ;;  %v616_v6 = vld [vmem:[#allocation7 + $0x10] sm:$0xff]  ;;  %1183 = vmatprep.subr.bf16.mxu1 %v1182_v12  ;;  %v619_v18 = vld [vmem:[#allocation7 + $0x28] sm:$0xff]  ;;  %v650_v19 = vld [vmem:[#allocation7 + $0x120] sm:$0xff] }
 0x331   :  { %v1152_v10 = vpack.c.bf16 %v617_v7, %v616_v6  ;;  %1185 = vmatpush3.bf16.msra.mxu1 %v1182_v12  ;;  %v1156_v20 = vpack.c.bf16 %v619_v18, %v618_v17  ;;  %v659_v6 = vld [vmem:[#allocation7 + $0x168] sm:$0xff]  ;;  %v1172_v7 = vpack.c.bf16 %v627_v4, %v626_v61  ;;  %v628_v12 = vld [vmem:[#allocation7 + $0x70] sm:$0xff]  ;;  %v661_v18 = vld [vmem:[#allocation7 + $0x178] sm:$0xff] }
 0x332   :  { %v496_v25 = vadd.f32 %v495_v22, %v1532_v23  ;;  %v506_v26 = vmul.f32 %v1532_v23, %v1532_v23  ;;  %v651_v22 = vld [vmem:[#allocation7 + $0x128] sm:$0xff]  ;;  %v1202_v9 = vpack.c.bf16 %v659_v6, %v658_v5  ;;  %v660_v17 = vld [vmem:[#allocation7 + $0x170] sm:$0xff] }
 0x333   :  { %1153 = vmatpush3.bf16.msra.mxu0 %v1152_v10  ;;  %v644_v10 = vld [vmem:[#allocation7 + $0xf0] sm:$0xff] }
 0x334   :  { %v497_v27 = vrot.slane %v496_v25, 4  ;;  %v509_v28 = vadd.f32 %v508_v24, %v506_v26  ;;  %1155 = vmatprep.subr.bf16.mxu0 %v1154_v16  ;;  %v1186_v24 = vpack.c.bf16 %v651_v22, %v650_v19  ;;  %v637_v26 = vld [vmem:[#allocation7 + $0xb8] sm:$0xff]  ;;  %v1174_v14 = vpack.c.bf16 %v645_v11, %v644_v10 }
 0x335   :  { %v1176_v16 = vpack.c.bf16 %v629_v15, %v628_v12  ;;  %v1206_v19 = vpack.c.bf16 %v661_v18, %v660_v17 }
 0x336   :  { %v498_v29 = vadd.f32 %v497_v27, %v496_v25  ;;  %v510_v30 = vrot.slane %v509_v28, 4  ;;  %v636_v25 = vld [vmem:[#allocation7 + $0xb0] sm:$0xff]  ;;  %1187 = vmatprep.subr.bf16.mxu1 %v1186_v24 }
 0x337   :  { %1157 = vmatpush3.bf16.msra.mxu0 %v1156_v20  ;;  %v1158_v27 = vpack.c.bf16 %v637_v26, %v636_v25  ;;  %1189 = vmatpush3.bf16.msra.mxu1 %v1186_v24 }
 0x338   :  { %v499_v31 = vrot.slane %v498_v29, 2  ;;  %v511_v33 = vadd.f32 %v510_v30, %v509_v28  ;;  %v620_v28 = vld [vmem:[#allocation7 + $0x30] sm:$0xff] }
 0x339   :  { %v652_v30 = vld [vmem:[#allocation7 + $0x130] sm:$0xff]  ;;  %1159 = vmatprep.subr.bf16.mxu0 %v1158_v27 }
 0x33a   :  { %v500_v34 = vadd.f32 %v499_v31, %v498_v29  ;;  %v512_v35 = vrot.slane %v511_v33, 2  ;;  %v621_v29 = vld [vmem:[#allocation7 + $0x38] sm:$0xff] }
 0x33b   :  { %v1160_v31 = vpack.c.bf16 %v621_v29, %v620_v28 }
 0x33c   :  { %v501_v36 = vrot.slane %v500_v34, 1  ;;  %v513_v37 = vadd.f32 %v512_v35, %v511_v33  ;;  %v653_v33 = vld [vmem:[#allocation7 + $0x138] sm:$0xff]  ;;  %v638_v35 = vld [vmem:[#allocation7 + $0xc0] sm:$0xff] }
 0x33d   :  { %1161 = vmatpush3.bf16.msra.mxu0 %v1160_v31 }
 0x33e   :  { %v514_v39 = vrot.slane %v513_v37, 1  ;;  %v502_v40 = vadd.f32 %v501_v36, %v500_v34  ;;  %v1190_v34 = vpack.c.bf16 %v653_v33, %v652_v30  ;;  %v639_v36 = vld [vmem:[#allocation7 + $0xc8] sm:$0xff] }
 0x340   :  { %v515_v41 = vadd.f32 %v514_v39, %v513_v37  ;;  %1191 = vmatprep.subr.bf16.mxu1 %v1190_v34  ;;  %v1162_v37 = vpack.c.bf16 %v639_v36, %v638_v35  ;;  %v622_v39 = vld [vmem:[#allocation7 + $0x40] sm:$0xff] }
 0x341   :  { %1193 = vmatpush3.bf16.msra.mxu1 %v1190_v34  ;;  %v492_v34 = vld [vmem:[%s1606_s3] sm:$0x1]  ;;  %s1327_s3 = smov [#allocation8]  }
 0x342   :  { %v516_v42 = vsel %vm157_vm0, %v502_v40, %v515_v41  ;;  %v623_v40 = vld [vmem:[#allocation7 + $0x48] sm:$0xff]  ;;  %v654_v41 = vld [vmem:[#allocation7 + $0x140] sm:$0xff]  ;;  %1163 = vmatprep.subr.bf16.mxu0 %v1162_v37 }
 0x343   :  { %517 = vrot.lane.b32.xlu0 %v516_v42, %s1321_s14 }
 0x3b5   :  { %v518_v43 = vpop.permute.xlu0 %517 }
 0x3b6   :  { %v519_v44 = vadd.f32 %v518_v43, %v516_v42  ;;  %v1164_v42 = vpack.c.bf16 %v623_v40, %v622_v39  ;;  %v655_v43 = vld [vmem:[#allocation7 + $0x148] sm:$0xff] }
 0x3b8   :  { %520 = vrot.lane.b32.xlu1 %v519_v44, %s1323_s6  ;;  %1165 = vmatpush3.bf16.msra.mxu0 %v1164_v42 }
 0x42a   :  { %v521_v45 = vpop.permute.xlu1 %520 }
 0x42b   :  { %v522_v46 = vadd.f32 %v521_v45, %v519_v44  ;;  %v1194_v44 = vpack.c.bf16 %v655_v43, %v654_v41  ;;  %v640_v45 = vld [vmem:[#allocation7 + $0xd0] sm:$0xff] }
 0x42d   :  { %523 = vrot.lane.b32.xlu0 %v522_v46, %s1324_s16  ;;  %1195 = vmatprep.subr.bf16.mxu1 %v1194_v44 }
 0x42e   :  { %1197 = vmatpush3.bf16.msra.mxu1 %v1194_v44 }
 0x42f   :  { %1199 = vmatprep.subr.bf16.mxu1 %v1198_v56 }
 0x432   :  { %1201 = vmatpush3.bf16.msra.mxu1 %v1198_v56 }
 0x433   :  { %1203 = vmatprep.subr.bf16.mxu1 %v1202_v9 }
 0x436   :  { %1205 = vmatpush3.bf16.msra.mxu1 %v1202_v9 }
 0x437   :  { %1207 = vmatprep.subr.bf16.mxu1 %v1206_v19 }
 0x43a   :  { %1209 = vmatpush3.bf16.msra.mxu1 %v1206_v19 }
 0x49f   :  { %v524_v47 = vpop.permute.xlu0 %523 }
 0x4a0   :  { %v1541_v48 = vadd.f32 %v524_v47, %v522_v46  ;;  %v641_v46 = vld [vmem:[#allocation7 + $0xd8] sm:$0xff] }
 0x4a1   :  { %v1166_v47 = vpack.c.bf16 %v641_v46, %v640_v45 }
 0x4a2   :  { %526 = vrot.lane.b32.xlu1 %v1541_v48, %s1325_s17 }
 0x4a3   :  { %1167 = vmatprep.subr.bf16.mxu0 %v1166_v47 }
 0x4a4   :  { %1169 = vmatpush3.bf16.msra.mxu0 %v1168_v54 }
 0x4a5   :  { %1171 = vmatprep.subr.bf16.mxu0 %v1170_v62 }
 0x4a8   :  { %1173 = vmatpush3.bf16.msra.mxu0 %v1172_v7 }
 0x4a9   :  { %1175 = vmatprep.subr.bf16.mxu0 %v1174_v14 }
 0x4ac   :  { %1177 = vmatpush3.bf16.msra.mxu0 %v1176_v16 }
 0x514   :  { %v527_v20 = vpop.permute.xlu1 %526 }
 0x515   :  { %v528_v22 = vadd.f32 %v527_v20, %v1541_v48  ;;  %v493_v48 = vld [vmem:[%s1607_s4] sm:$0x1]  ;;  %s845_s4 = sshll.u32 %s1327_s3, 4  ;;  %s846_s4 = int_to_ptr.vmem [resolvable:$true] %s845_s4 }
 0x516   :  { %s1290_s24 = scalar_lea.vmem %s846_s4, 512  ;;  %p1295_p11 = scmp.lt.s32.totalorder %s846_s4, %s846_s4 }
 0x517   :  { %v529_v24 = vmul.f32 0.001953125, %v528_v22  ;;  %p1291_p10 = scmp.ne.s32.totalorder %s846_s4, %s1290_s24  ;;  %p1296_p12 = scmp.lt.s32.totalorder %s1290_s24, %s1290_s24 }
 0x519   :  { %v530_v25 = vmul.f32 %v529_v24, %v529_v24  ;;  %p1297_p13 = por %p1296_p12, %p1295_p11 }
 0x51b   :  { %v532_v26 = vrot.slane %v530_v25, 7  ;;  %p1298_p0 = pnand %p1297_p13, %p1291_p10 }
 0x51d   :  { %v534_v27 = vsub.f32 %v529_v24, %v532_v26 }
 0x51f   :  { %v535_v28 = vmax.f32 %v534_v27, 0.0 }
 0x521   :  { %v536_v29 = vadd.f32 1e-05, %v535_v28 }
 0x523   :  { %1222 = vrsqrt.f32 %v536_v29 }
 0x52d   :  { %v1223_v30 = vpop.eup %1222 }
 0x52e   :  { %v545_v31 = vrot.slane %v1223_v30, %v1452_v59 }
 0x530   :  { %v546_v33 = vcombine.high %v545_v31, %v545_v31 }
 0x532   :  { %v553_v35 = vrot.slane %v546_v33, %v1452_v59 }
 0x534   :  { %v555_v36 = vmul.f32 %v553_v35, %v492_v34 }
 0x536   :  { %v556_v37 = vmul.f32 %v555_v36, %v529_v24  ;;  %v562_v39 = vrot.slane %v555_v36, %v1459_v63 }
 0x538   :  { %v557_v40 = vsub.f32 %v493_v48, %v556_v37  ;;  %v566_v41 = vmul.f32 %v562_v39, %v1523_v13  ;;  %v567_v42 = vmul.f32 %v562_v39, %v1532_v23  ;;  %v564_v44 = vmul.f32 %v562_v39, %v1517_v32 }
 0x539   :  { %v565_v45 = vmul.f32 %v562_v39, %v1519_v8 }
 0x53a   :  { %v572_v43 = vrot.slane %v557_v40, %v1459_v63 }
 0x53c   :  { %v576_v59 = vadd.f32 %v572_v43, %v566_v41  ;;  %v577_v46 = vadd.f32 %v572_v43, %v567_v42  ;;  %v574_v47 = vadd.f32 %v572_v43, %v564_v44  ;;  %v575_v50 = vadd.f32 %v572_v43, %v565_v45 }
 0x53e   :  { %vm578_vm11 = vcmp.ge.f32.partialorder %v574_v47, 0.0  ;;  %v582_v51 = vmul.f32 0.01, %v574_v47  ;;  %vm581_vm12 = vcmp.ge.f32.partialorder %v577_v46, 0.0  ;;  %v585_v53 = vmul.f32 0.01, %v577_v46 }
 0x53f   :  { %vm579_vm13 = vcmp.ge.f32.partialorder %v575_v50, 0.0  ;;  %v583_v54 = vmul.f32 0.01, %v575_v50  ;;  %vm580_vm14 = vcmp.ge.f32.partialorder %v576_v59, 0.0  ;;  %v584_v13 = vmul.f32 0.01, %v576_v59 }
 0x540   :  { %v586_v55 = vsel %vm578_vm11, %v574_v47, %v582_v51  ;;  %v589_v23 = vsel %vm581_vm12, %v577_v46, %v585_v53 }
 0x541   :  { %v590_v56 = vrot.slane %v586_v55, 7  ;;  %v602_v63 = vrot.slane %v586_v55, 1  ;;  %726 = vmatprep.mubr.f32.mxu0 %v586_v55  ;;  %v593_v32 = vrot.slane %v589_v23, 7  ;;  %v587_v58 = vsel %vm579_vm13, %v575_v50, %v583_v54 }
 0x542   :  { %v603_v8 = vrot.slane %v587_v58, 1  ;;  %v588_v60 = vsel %vm580_vm14, %v576_v59, %v584_v13  ;;  %v605_v61 = vrot.slane %v589_v23, 1  ;;  %v591_v5 = vrot.slane %v587_v58, 7 }
 0x543   :  { %v597_v62 = vsel %vm236_vm1, %v593_v32, %v590_v56  ;;  %v604_v4 = vrot.slane %v588_v60, 1  ;;  %v592_v21 = vrot.slane %v588_v60, 7 }
 0x544   :  { %867 = vmatmul.mubr.msk.f32.vlgmr.msra.gmra.mrb[8].mxu0 %vm1474_vm2, %v597_v62  ;;  %v608_v6 = vsel %vm257_vm7, %v602_v63, %v603_v8  ;;  %v596_v10 = vsel %vm236_vm1, %v590_v56, %v591_v5  ;;  %v609_v11 = vsel %vm257_vm7, %v605_v61, %v602_v63 }
 0x545   :  { %1076 = vmatprep.mubr.f32.mxu1 %v608_v6  ;;  %731 = vmatprep.mubr.f32.mxu0 %v587_v58  ;;  %v607_v7 = vsel %vm257_vm7, %v603_v8, %v604_v4  ;;  %v606_v9 = vsel %vm257_vm7, %v604_v4, %v605_v61  ;;  %v595_v38 = vsel %vm236_vm1, %v591_v5, %v592_v21 }
 0x546   :  { %1077 = vmatmul.mubr.msk.f32.vlgmr.msra.gmra.mrb[4].mxu1 %vm1481_vm8, %v607_v7  ;;  %v594_v12 = vsel %vm236_vm1, %v592_v21, %v593_v32 }
 0x547   :  { %1079 = vmatprep.mubr.f32.mxu1 %v606_v9 }
 0x548   :  { %732 = vmatmul.mubr.f32.gmra.mrb[10].mxu0 %v596_v10 }
 0x549   :  { %736 = vmatprep.mubr.f32.mxu0 %v588_v60 }
 0x54a   :  { %1080 = vmatmul.mubr.msk.f32.gmra.mrb[6].mxu1 %vm1499_vm9, %v609_v11 }
 0x54c   :  { %869 = vmatmul.mubr.msk.f32.gmra.mrb[12].mxu0 %vm1505_vm10, %v595_v38 }
 0x54d   :  { %741 = vmatprep.mubr.f32.mxu0 %v589_v23 }
 0x550   :  { %742 = vmatmul.mubr.f32.gmra.mrb[14].mxu0 %v594_v12 }
 0x617   :  { %v974_v14 = vpop.f32.mrb[8].mxu0 }
 0x618   :  { %v975_v15 = vpop.f32.mrb[9].mxu0 }
 0x619   :  { %v976_v16 = vadd.f32 %v975_v15, %v974_v14  ;;  %v1078_v17 = vpop.f32.mrb[4].mxu1 }
 0x61a   :  { %v813_v18 = vpop.f32.mrb[5].mxu1 }
 0x61b   :  { %v814_v19 = vadd.f32 %v976_v16, %v813_v18  ;;  %v977_v20 = vpop.f32.mrb[10].mxu0 }
 0x61c   :  { %v978_v49 = vpop.f32.mrb[11].mxu0 }
 0x61d   :  { %v832_v22 = vadd.f32 %v814_v19, %v1420_v0  ;;  %v979_v24 = vadd.f32 %v978_v49, %v977_v20  ;;  %v1081_v25 = vpop.f32.mrb[6].mxu1 }
 0x61e   :  { %v823_v26 = vpop.f32.mrb[7].mxu1 }
 0x61f   :  { %836 = vst [vmem:[#allocation8] sm:$0xff] %v832_v22  ;;  %v819_v52 = vadd.f32 %v1078_v17, %v979_v24  ;;  %v980_v27 = vpop.f32.mrb[12].mxu0 }
 0x620   :  { %v981_v28 = vpop.f32.mrb[13].mxu0 }
 0x621   :  { %v833_v57 = vadd.f32 %v819_v52, %v1422_v1  ;;  %v982_v29 = vadd.f32 %v981_v28, %v980_v27 }
 0x623   :  { %837 = vst [vmem:[#allocation8 + $0x8] sm:$0xff] %v833_v57  ;;  %v824_v30 = vadd.f32 %v982_v29, %v823_v26  ;;  %v983_v31 = vpop.f32.mrb[14].mxu0 }
 0x624   :  { %v984_v33 = vpop.f32.mrb[15].mxu0 }
 0x625   :  { %v834_v34 = vadd.f32 %v824_v30, %v1424_v2  ;;  %v985_v35 = vadd.f32 %v984_v33, %v983_v31 }
 0x627   :  { %838 = vst [vmem:[#allocation8 + $0x10] sm:$0xff] %v834_v34  ;;  %v829_v0 = vadd.f32 %v1081_v25, %v985_v35 }
 0x629   :  { %v835_v36 = vadd.f32 %v829_v0, %v1426_v3 }
 0x62b   :  { %839 = vst [vmem:[#allocation8 + $0x18] sm:$0xff] %v835_v36 }
 0x62c   :  { %1301 = shalt.err (!%p1298_p0)
}
 0x62d   :  { %s1302_s26 = scalar_lea.hbm %s1610_s7, 512 }
 0x62e   :  { %p1303_p1 = scmp.ne.s32.totalorder %s1610_s7, %s1302_s26  ;;  %p1306_p2 = scmp.lt.u32.totalorder %s1302_s26, %s1610_s7 }
 0x630   :  { %p1308_p3 = pnand %p1306_p2, %p1303_p1 }
 0x632   :  { %1311 = shalt.err (!%p1308_p3)
}
 0x633   :  { %851 = dma.vmem_to_hbm [thread:$0]  %s846_s4, 512, %s1610_s7, [#allocation4], %s1320_s13, %s1320_s13, %s1321_s14  }
 0x634   :  { %1316 = dma.done.wait [#allocation4], 512  }
 0x635   :  { %1317 = vsyncadd [#allocation4], 4294966784 }
 0x636   :  { %855 = vsyncpa [#allocation3], 1 }
 0x637   :  { %856 = vsyncpa [#allocation6], 1 }
 0x638   :  { %857 = vsyncpa [#allocation4], 1 }

</bundles_post_ra>
